<compile_context>
chip_gen: v5e
topology: v5e:2x2
jax: 0.10.0
libtpu: 0.0.40
codegen_flags: <defaults>
</compile_context>

<pallas_src>
import math

import jax
import jax.numpy as jnp
from jax.experimental import pallas as pl
from jax.experimental.pallas import tpu as pltpu

LANE = 128


def _mlp_epilogue(agg, xres, w1, w2, biases, out_ref):
    """GCN epilogue + residual + 2 hidden MLP layers; stores bf16 activations."""
    c_pad = xres.shape[1]
    h_pad = w1.shape[1]
    bg = biases[0:1, 0:c_pad]
    b1 = biases[1:2, 0:h_pad]
    b2 = biases[2:3, 0:h_pad]

    h = jnp.maximum(agg + bg, 0.0)          # GCNConv bias + ReLU (f32, VPU)
    x1 = h + xres                           # residual (f32)
    x2 = jnp.maximum(
        jnp.dot(x1.astype(jnp.bfloat16), w1,
                preferred_element_type=jnp.float32) + b1, 0.0)
    x3 = jnp.maximum(
        jnp.dot(x2.astype(jnp.bfloat16), w2,
                preferred_element_type=jnp.float32) + b2, 0.0)
    out_ref[...] = x3.astype(out_ref.dtype)  # lane-dense bf16 store


def gnn_actor_small_kernel(adj_ref, xw_ref, xres_ref, w1_ref, w2_ref, b_ref,
                           out_ref):
    """Single-block path: whole (padded) graph fits in VMEM; no grid machinery."""
    agg = jnp.dot(adj_ref[...], xw_ref[...], preferred_element_type=jnp.float32)
    _mlp_epilogue(agg, xres_ref[...], w1_ref[...], w2_ref[...], b_ref[...],
                  out_ref)


def gnn_actor_tiled_kernel(adj_ref, xw_ref, xres_ref, w1_ref, w2_ref, b_ref,
                           out_ref, acc_ref):
    """Tiled path: row-tile i ("parallel") x contraction-tile k ("arbitrary")."""
    k = pl.program_id(1)

    @pl.when(k == 0)
    def _():
        acc_ref[...] = jnp.zeros_like(acc_ref)

    # acc[i] += A_hat[i, k] @ XW[k]   (bf16 operands, f32 accumulation)
    acc_ref[...] += jnp.dot(adj_ref[...], xw_ref[...],
                            preferred_element_type=jnp.float32)

    @pl.when(k == pl.num_programs(1) - 1)
    def _():
        _mlp_epilogue(acc_ref[...], xres_ref[...], w1_ref[...], w2_ref[...],
                      b_ref[...], out_ref)


def _round_up(v, m):
    return ((v + m - 1) // m) * m


def _pad2(a, rows, cols):
    return jnp.pad(a, ((0, rows - a.shape[0]), (0, cols - a.shape[1])))


def gnn_actor_forward(adj_norm, x, params, *, tm=512, tk=512,
                      small_n_max=512, force_tiled=False):
    """GNNActor forward.  Heavy compute runs inside one Pallas kernel; the
    X @ Wg pre-projection and the final 32->1 projection (+ b3) are tiny ops in
    the wrapper on unpadded data."""
    N, C = x.shape
    H = params["w1"].shape[1]

    c_pad = _round_up(max(C, LANE), LANE)
    h_pad = _round_up(max(H, LANE), LANE)
    b_pad = max(c_pad, h_pad)

    use_small = (not force_tiled) and (_round_up(N, LANE) <= small_n_max)
    if use_small:
        n_pad = _round_up(max(N, LANE), LANE)
    else:
        assert tm % LANE == 0 and tk % LANE == 0
        step = math.lcm(tm, tk)
        n_pad = _round_up(max(N, step), step)

    # --- wrapper-side prep (all tiny except the adjacency pad) ---------------
    # X @ Wg hoisted out of the kernel grid: computed once, in f32, then bf16.
    xw = jnp.dot(x.astype(jnp.float32), params["wg"],
                 preferred_element_type=jnp.float32)
    xw_p = _pad2(xw, n_pad, c_pad).astype(jnp.bfloat16)
    xres_p = _pad2(x.astype(jnp.float32), n_pad, c_pad)       # residual (f32)
    # Cast to bf16 first, then pad (single cheap N^2 pass); cache upstream if
    # A_hat is reused across steps.
    adj_p = _pad2(adj_norm.astype(jnp.bfloat16), n_pad, n_pad)
    w1_p = _pad2(params["w1"], c_pad, h_pad).astype(jnp.bfloat16)
    w2_p = _pad2(params["w2"], h_pad, h_pad).astype(jnp.bfloat16)

    # Small biases packed into one (8, 128) VMEM slab: row0=bg, row1=b1, row2=b2.
    biases = jnp.zeros((8, b_pad), jnp.float32)
    biases = biases.at[0, :C].set(params["bg"].reshape(-1))
    biases = biases.at[1, :H].set(params["b1"].reshape(-1))
    biases = biases.at[2, :H].set(params["b2"].reshape(-1))

    if use_small:
        x3_pad = pl.pallas_call(
            gnn_actor_small_kernel,
            out_shape=jax.ShapeDtypeStruct((n_pad, h_pad), jnp.bfloat16),
        )(adj_p, xw_p, xres_p, w1_p, w2_p, biases)
    else:
        grid = (n_pad // tm, n_pad // tk)
        x3_pad = pl.pallas_call(
            gnn_actor_tiled_kernel,
            out_shape=jax.ShapeDtypeStruct((n_pad, h_pad), jnp.bfloat16),
            grid_spec=pltpu.PrefetchScalarGridSpec(
                num_scalar_prefetch=0,
                grid=grid,
                in_specs=[
                    pl.BlockSpec((tm, tk), lambda i, k: (i, k)),        # A_hat tile
                    pl.BlockSpec((tk, c_pad), lambda i, k: (k, 0)),     # XW[k] (bf16)
                    pl.BlockSpec((tm, c_pad), lambda i, k: (i, 0)),     # X residual (f32)
                    pl.BlockSpec((c_pad, h_pad), lambda i, k: (0, 0)),  # W1 (resident)
                    pl.BlockSpec((h_pad, h_pad), lambda i, k: (0, 0)),  # W2 (resident)
                    pl.BlockSpec((8, b_pad), lambda i, k: (0, 0)),      # packed biases
                ],
                out_specs=pl.BlockSpec((tm, h_pad), lambda i, k: (i, 0)),
                scratch_shapes=[pltpu.VMEM((tm, c_pad), jnp.float32)],
            ),
            compiler_params=pltpu.CompilerParams(
                dimension_semantics=("parallel", "arbitrary"),
                vmem_limit_bytes=32 * 1024 * 1024,
            ),
        )(adj_p, xw_p, xres_p, w1_p, w2_p, biases)

    # Final Linear(32, 1): lane-sparse, kept off the MXU / out of the kernel.
    x3 = x3_pad[:N, :H].astype(jnp.float32)
    return x3 @ params["w3"] + params["b3"]


def build_normalized_adjacency(edge_index, num_nodes):
    """Dense D^{-1/2}(A + I)D^{-1/2} as used by PyG GCNConv."""
    src, dst = edge_index
    A = jnp.zeros((num_nodes, num_nodes), jnp.float32).at[dst, src].add(1.0)
    A_hat = A + jnp.eye(num_nodes, dtype=jnp.float32)
    deg = A_hat.sum(axis=1)
    d_inv_sqrt = jnp.where(deg > 0, 1.0 / jnp.sqrt(deg), 0.0)
    return d_inv_sqrt[:, None] * A_hat * d_inv_sqrt[None, :]


def init_params(key, in_channels, hidden=32):
    ks = jax.random.split(key, 8)
    scale = 0.1
    # Weights stored as [in, out] (transposed PyTorch Linear convention).
    return {
        "wg": scale * jax.random.normal(ks[0], (in_channels, in_channels), jnp.float32),
        "bg": scale * jax.random.normal(ks[1], (1, in_channels), jnp.float32),
        "w1": scale * jax.random.normal(ks[2], (in_channels, hidden), jnp.float32),
        "b1": scale * jax.random.normal(ks[3], (1, hidden), jnp.float32),
        "w2": scale * jax.random.normal(ks[4], (hidden, hidden), jnp.float32),
        "b2": scale * jax.random.normal(ks[5], (1, hidden), jnp.float32),
        "w3": scale * jax.random.normal(ks[6], (hidden, 1), jnp.float32),
        "b3": scale * jax.random.normal(ks[7], (1, 1), jnp.float32),
    }


def reference_forward(adj_norm, x, params):
    """Pure-JAX reference mirroring the kernel's bf16-matmul / f32-accumulate math."""
    bf16, f32 = jnp.bfloat16, jnp.float32
    xw = jnp.dot(x.astype(f32), params["wg"], preferred_element_type=f32).astype(bf16)
    agg = jnp.dot(adj_norm.astype(bf16), xw, preferred_element_type=f32)
    h = jnp.maximum(agg + params["bg"], 0.0)
    x1 = h + x
    x2 = jnp.maximum(jnp.dot(x1.astype(bf16), params["w1"].astype(bf16),
                             preferred_element_type=f32) + params["b1"], 0.0)
    x3 = jnp.maximum(jnp.dot(x2.astype(bf16), params["w2"].astype(bf16),
                             preferred_element_type=f32) + params["b2"], 0.0)
    x3 = x3.astype(bf16).astype(f32)   # kernel emits bf16 activations
    return x3 @ params["w3"] + params["b3"]


if __name__ == "__main__":
    key = jax.random.PRNGKey(0)
    k_x, k_p, k_x2 = jax.random.split(key, 3)

    C = 4            # in_channels
    H = 32           # hidden width
    params = init_params(k_p, C, hidden=H)

    # ---- tiny graph (the actual GNNActor regime): single-block kernel path ----
    N = 8
    idx = jnp.arange(N, dtype=jnp.int32)
    src = jnp.concatenate([idx, (idx + 1) % N])
    dst = jnp.concatenate([(idx + 1) % N, idx])
    x = jax.random.normal(k_x, (N, C), jnp.float32)
    adj_norm = build_normalized_adjacency((src, dst), N)

    out = jax.block_until_ready(gnn_actor_forward(adj_norm, x, params))
    ref = reference_forward(adj_norm, x, params)
    assert out.shape == (N, 1)
    assert jnp.allclose(out, ref, atol=2e-3, rtol=2e-3)

    # ---- larger graph: exercise the tiled (grid) path with a real k-loop ----
    N2 = 600
    idx2 = jnp.arange(N2, dtype=jnp.int32)
    src2 = jnp.concatenate([idx2, (idx2 + 1) % N2, idx2, (idx2 + 7) % N2])
    dst2 = jnp.concatenate([(idx2 + 1) % N2, idx2, (idx2 + 7) % N2, idx2])
    x2 = jax.random.normal(k_x2, (N2, C), jnp.float32)
    adj_norm2 = build_normalized_adjacency((src2, dst2), N2)

    out2 = jax.block_until_ready(
        gnn_actor_forward(adj_norm2, x2, params, tm=256, tk=256, force_tiled=True))
    ref2 = reference_forward(adj_norm2, x2, params)
    assert out2.shape == (N2, 1)
    assert jnp.allclose(out2, ref2, atol=2e-3, rtol=2e-3)

    print("KERNEL_OK")
</pallas_src>

<mosaic_0001>
module attributes {stable_mosaic.version = 11 : i64} {
  func.func @gnn_actor_small_kernel(%arg0: memref<128x128xbf16, #tpu.memory_space<vmem>>, %arg1: memref<128x128xbf16, #tpu.memory_space<vmem>>, %arg2: memref<128x128xf32, #tpu.memory_space<vmem>>, %arg3: memref<128x128xbf16, #tpu.memory_space<vmem>>, %arg4: memref<128x128xbf16, #tpu.memory_space<vmem>>, %arg5: memref<8x128xf32, #tpu.memory_space<vmem>>, %arg6: memref<128x128xbf16, #tpu.memory_space<vmem>>) attributes {dimension_semantics = [], scalar_prefetch = 0 : i64, scratch_operands = 0 : i64, tpu.core_type = #tpu.core_type<tc>} {
    %c0 = arith.constant 0 : index
    %c0_0 = arith.constant 0 : index
    %0 = vector.load %arg0[%c0, %c0_0] : memref<128x128xbf16, #tpu.memory_space<vmem>>, vector<128x128xbf16>
    %c0_1 = arith.constant 0 : index
    %c0_2 = arith.constant 0 : index
    %1 = vector.load %arg1[%c0_1, %c0_2] : memref<128x128xbf16, #tpu.memory_space<vmem>>, vector<128x128xbf16>
    %cst = arith.constant dense<0.000000e+00> : vector<128x128xf32>
    %2 = tpu.matmul %0, %1, %cst {dimension_numbers = #tpu.dot_dimension_numbers<[1], [0], [0], [1], [0, 0, 1, 1], [], []>} : vector<128x128xbf16>, vector<128x128xbf16>, vector<128x128xf32> -> vector<128x128xf32>
    %c0_3 = arith.constant 0 : index
    %c0_4 = arith.constant 0 : index
    %3 = vector.load %arg2[%c0_3, %c0_4] : memref<128x128xf32, #tpu.memory_space<vmem>>, vector<128x128xf32>
    %c0_5 = arith.constant 0 : index
    %c0_6 = arith.constant 0 : index
    %4 = vector.load %arg3[%c0_5, %c0_6] : memref<128x128xbf16, #tpu.memory_space<vmem>>, vector<128x128xbf16>
    %c0_7 = arith.constant 0 : index
    %c0_8 = arith.constant 0 : index
    %5 = vector.load %arg4[%c0_7, %c0_8] : memref<128x128xbf16, #tpu.memory_space<vmem>>, vector<128x128xbf16>
    %c0_9 = arith.constant 0 : index
    %c0_10 = arith.constant 0 : index
    %6 = vector.load %arg5[%c0_9, %c0_10] : memref<8x128xf32, #tpu.memory_space<vmem>>, vector<8x128xf32>
    %7 = vector.extract_strided_slice %6 {offsets = [0, 0], sizes = [1, 128], strides = [1, 1]} : vector<8x128xf32> to vector<1x128xf32>
    %8 = vector.extract_strided_slice %6 {offsets = [1, 0], sizes = [1, 128], strides = [1, 1]} : vector<8x128xf32> to vector<1x128xf32>
    %9 = vector.extract_strided_slice %6 {offsets = [2, 0], sizes = [1, 128], strides = [1, 1]} : vector<8x128xf32> to vector<1x128xf32>
    %10 = vector.broadcast %7 : vector<1x128xf32> to vector<128x128xf32>
    %11 = arith.addf %2, %10 : vector<128x128xf32>
    %cst_11 = arith.constant 0.000000e+00 : f32
    %12 = vector.broadcast %cst_11 : f32 to vector<128x128xf32>
    %13 = arith.maximumf %11, %12 : vector<128x128xf32>
    %14 = arith.addf %13, %3 : vector<128x128xf32>
    %15 = arith.truncf %14 : vector<128x128xf32> to vector<128x128xbf16>
    %cst_12 = arith.constant dense<0.000000e+00> : vector<128x128xf32>
    %16 = tpu.matmul %15, %4, %cst_12 {dimension_numbers = #tpu.dot_dimension_numbers<[1], [0], [0], [1], [0, 0, 1, 1], [], []>} : vector<128x128xbf16>, vector<128x128xbf16>, vector<128x128xf32> -> vector<128x128xf32>
    %17 = vector.broadcast %8 : vector<1x128xf32> to vector<128x128xf32>
    %18 = arith.addf %16, %17 : vector<128x128xf32>
    %cst_13 = arith.constant 0.000000e+00 : f32
    %19 = vector.broadcast %cst_13 : f32 to vector<128x128xf32>
    %20 = arith.maximumf %18, %19 : vector<128x128xf32>
    %21 = arith.truncf %20 : vector<128x128xf32> to vector<128x128xbf16>
    %cst_14 = arith.constant dense<0.000000e+00> : vector<128x128xf32>
    %22 = tpu.matmul %21, %5, %cst_14 {dimension_numbers = #tpu.dot_dimension_numbers<[1], [0], [0], [1], [0, 0, 1, 1], [], []>} : vector<128x128xbf16>, vector<128x128xbf16>, vector<128x128xf32> -> vector<128x128xf32>
    %23 = vector.broadcast %9 : vector<1x128xf32> to vector<128x128xf32>
    %24 = arith.addf %22, %23 : vector<128x128xf32>
    %cst_15 = arith.constant 0.000000e+00 : f32
    %25 = vector.broadcast %cst_15 : f32 to vector<128x128xf32>
    %26 = arith.maximumf %24, %25 : vector<128x128xf32>
    %27 = arith.truncf %26 : vector<128x128xf32> to vector<128x128xbf16>
    %c0_16 = arith.constant 0 : index
    %c0_17 = arith.constant 0 : index
    %28 = vector.load %arg6[%c0_16, %c0_17] : memref<128x128xbf16, #tpu.memory_space<vmem>>, vector<128x128xbf16>
    tpu.vector_store %arg6[%c0_16, %c0_17], %27 {strides = array<i32>} : memref<128x128xbf16, #tpu.memory_space<vmem>>, vector<128x128xbf16>,
    return
  }
}

</mosaic_0001>

<bundles_post_ra>
// kernel: tpu_custom_call.1
= control target key start
LH: loop header
LB: loop body
LE: loop exit
PB: predicated region body
PF: predicated region fallthrough
CT: control target
= control target key end

     0   :  { %11 = vsyncpa [#allocation3], 0  ;;  %s1198_s0 = inlined_call_operand.hbm [shape: bf16[128,128], index: 0, kind: input, shape index: {}]   ;;  %s1199_s1 = inlined_call_operand.hbm [shape: bf16[128,128], index: 1, kind: input, shape index: {}]   ;;  %s1200_s2 = inlined_call_operand.hbm [shape: f32[128,128], index: 2, kind: input, shape index: {}]   ;;  %s1201_s3 = inlined_call_operand.hbm [shape: bf16[128,128], index: 3, kind: input, shape index: {}]   ;;  %s1202_s4 = inlined_call_operand.hbm [shape: bf16[128,128], index: 4, kind: input, shape index: {}]   ;;  %s1203_s5 = inlined_call_operand.hbm [shape: f32[8,128], index: 5, kind: input, shape index: {}]   ;;  %s1204_s6 = inlined_call_operand.hbm [shape: bf16[128,128], index: 6, kind: output, shape index: {}]  }
   0x1   :  { %12 = vsyncpa [#allocation6], 0 }
   0x2   :  { %13 = vsyncpa [#allocation9], 0 }
   0x3   :  { %14 = vsyncpa [#allocation12], 0 }
   0x4   :  { %15 = vsyncpa [#allocation4], 0  ;;  %s33_s23 = sshll.u32 %s1199_s1, 4  ;;  %s1093_s24 = smov [#allocation5]   ;;  %s34_s23 = int_to_ptr.hbm [resolvable:$true] %s33_s23 }
   0x5   :  { %s35_s25 = sshll.u32 %s1093_s24, 4  ;;  %s59_s28 = sshll.u32 %s1201_s3, 4  ;;  %s36_s25 = int_to_ptr.vmem [resolvable:$true] %s35_s25  ;;  %s60_s28 = int_to_ptr.hbm [resolvable:$true] %s59_s28 }
   0x6   :  { %s1094_s29 = smov 64   ;;  %s1095_s30 = smov 4  }
   0x7   :  { %41 = dma.hbm_to_vmem [thread:$0]  %s34_s23, 1024, %s36_s25, [#allocation6], %s1094_s29, %s1094_s29, %s1095_s30  }
   0x8   :  { %s1096_s7 = smov [#allocation8]   ;;  %s20_s1 = sshll.u32 %s1198_s0, 4  ;;  %s21_s1 = int_to_ptr.hbm [resolvable:$true] %s20_s1 }
   0x9   :  { %s61_s8 = sshll.u32 %s1096_s7, 4  ;;  %s46_s12 = sshll.u32 %s1200_s2, 4  ;;  %s62_s8 = int_to_ptr.vmem [resolvable:$true] %s61_s8  ;;  %s47_s12 = int_to_ptr.hbm [resolvable:$true] %s46_s12 }
   0xa   :  { %67 = dma.hbm_to_vmem [thread:$0]  %s60_s28, 1024, %s62_s8, [#allocation9], %s1094_s29, %s1094_s29, %s1095_s30  }
   0xb   :  { %s1097_s13 = smov [#allocation2]   ;;  %s1098_s15 = smov [#allocation7]  }
   0xc   :  { %s22_s14 = sshll.u32 %s1097_s13, 4  ;;  %s48_s0 = sshll.u32 %s1098_s15, 4  ;;  %s23_s14 = int_to_ptr.vmem [resolvable:$true] %s22_s14  ;;  %s49_s0 = int_to_ptr.vmem [resolvable:$true] %s48_s0 }
   0xd   :  { %28 = dma.hbm_to_vmem [thread:$0]  %s21_s1, 1024, %s23_s14, [#allocation3], %s1094_s29, %s1094_s29, %s1095_s30  }
   0xe   :  { %s1099_s16 = smov 128   ;;  %s1100_s17 = smov 8  }
   0xf   :  { %54 = dma.hbm_to_vmem [thread:$0]  %s47_s12, 2048, %s49_s0, [#allocation6], %s1099_s16, %s1099_s16, %s1100_s17  }
  0x10   :  { %s72_s20 = sshll.u32 %s1202_s4, 4  ;;  %s1101_s2 = smov [#allocation10]   ;;  %s73_s20 = int_to_ptr.hbm [resolvable:$true] %s72_s20 }
  0x11   :  { %s74_s21 = sshll.u32 %s1101_s2, 4  ;;  %s86_s24 = sshll.u32 %s1203_s5, 4  ;;  %s75_s21 = int_to_ptr.vmem [resolvable:$true] %s74_s21  ;;  %s87_s24 = int_to_ptr.hbm [resolvable:$true] %s86_s24 }
  0x12   :  { %80 = dma.hbm_to_vmem [thread:$0]  %s73_s20, 1024, %s75_s21, [#allocation9], %s1094_s29, %s1094_s29, %s1095_s30  }
  0x13   :  { %s1102_s25 = smov [#allocation11]  }
  0x14   :  { %s88_s26 = sshll.u32 %s1102_s25, 4  ;;  %s89_s26 = int_to_ptr.vmem [resolvable:$true] %s88_s26 }
  0x15   :  { %91 = dma.hbm_to_vmem [thread:$0]  %s87_s24, 128, %s89_s26, [#allocation12]  }
  0x16   :  { %1083 = dma.done.wait [#allocation3], 1024  }
  0x17   :  { %1084 = vsyncadd [#allocation3], 4294966272 }
  0x18   :  { %1085 = dma.done.wait [#allocation6], 3072  }
  0x19   :  { %1086 = vsyncadd [#allocation6], 4294964224 }
  0x1a   :  { %1087 = dma.done.wait [#allocation9], 2048  }
  0x1b   :  { %1088 = vsyncadd [#allocation9], 4294965248 }
  0x1c   :  { %1089 = dma.done.wait [#allocation12], 128  }
  0x1d   :  { %1090 = vsyncadd [#allocation12], 4294967168  ;;  %v816_v0 = vld [vmem:[#allocation5 + $0x38] sm:$0xff]  ;;  %v815_v1 = vld [vmem:[#allocation5 + $0x30] sm:$0xff]  ;;  %s1103_s4 = smov [#allocation13]   ;;  %s657_s7 = sshll.u32 %s1204_s6, 4  ;;  %s658_s7 = int_to_ptr.hbm [resolvable:$true] %s657_s7 }
  0x1e   :  { %294 = vmatpush.bf16.msra.mxu0 %v816_v0  ;;  %880 = vmatpush.bf16.msra.mxu3 %v816_v0  ;;  %v814_v2 = vld [vmem:[#allocation5 + $0x28] sm:$0xff]  ;;  %v813_v3 = vld [vmem:[#allocation5 + $0x20] sm:$0xff]  ;;  %v812_v4 = vld [vmem:[#allocation5 + $0x18] sm:$0xff]  ;;  %s655_s5 = sshll.u32 %s1103_s4, 4  ;;  %s656_s5 = int_to_ptr.vmem [resolvable:$true] %s655_s5 }
  0x1f   :  { %v811_v5 = vld [vmem:[#allocation5 + $0x10] sm:$0xff]  ;;  %v810_v6 = vld [vmem:[#allocation5 + $0x8] sm:$0xff]  ;;  %v809_v7 = vld [vmem:[#allocation5] sm:$0xff] }
  0x20   :  { %v801_v8 = vld [vmem:[#allocation2] sm:$0xff]  ;;  %v807_v9 = vld [vmem:[#allocation2 + $0x30] sm:$0xff]  ;;  %v802_v10 = vld [vmem:[#allocation2 + $0x8] sm:$0xff] }
  0x21   :  { %v808_v11 = vld [vmem:[#allocation2 + $0x38] sm:$0xff]  ;;  %v803_v12 = vld [vmem:[#allocation2 + $0x10] sm:$0xff]  ;;  %v822_v16 = vld [vmem:[#allocation8 + $0x28] sm:$0xff] }
  0x22   :  { %295 = vmatpush.bf16.msra.mxu0 %v815_v1  ;;  %881 = vmatpush.bf16.msra.mxu3 %v815_v1  ;;  %v804_v13 = vld [vmem:[#allocation2 + $0x18] sm:$0xff]  ;;  %v823_v15 = vld [vmem:[#allocation8 + $0x30] sm:$0xff]  ;;  %v821_v17 = vld [vmem:[#allocation8 + $0x20] sm:$0xff] }
  0x23   :  { %v824_v14 = vld [vmem:[#allocation8 + $0x38] sm:$0xff]  ;;  %v805_v18 = vld [vmem:[#allocation2 + $0x20] sm:$0xff]  ;;  %v806_v19 = vld [vmem:[#allocation2 + $0x28] sm:$0xff] }
  0x24   :  { %432 = vmatpush.bf16.msra.mxu1 %v824_v14  ;;  %v820_v20 = vld [vmem:[#allocation8 + $0x18] sm:$0xff]  ;;  %v819_v21 = vld [vmem:[#allocation8 + $0x10] sm:$0xff]  ;;  %v818_v22 = vld [vmem:[#allocation8 + $0x8] sm:$0xff] }
  0x25   :  { %v817_v23 = vld [vmem:[#allocation8] sm:$0xff]  ;;  %v149_v34 = vld [vmem:[#allocation7 + $0x8] sm:$0xff]  ;;  %v150_v55 = vld [vmem:[#allocation7 + $0x10] sm:$0xff] }
  0x26   :  { %296 = vmatpush.bf16.msra.mxu0 %v814_v2  ;;  %882 = vmatpush.bf16.msra.mxu3 %v814_v2  ;;  %v1169_v24 = vld [vmem:[#allocation11] sm:$0xff]  ;;  %v161_v44 = vld [vmem:[#allocation7 + $0x68] sm:$0xff]  ;;  %v151_v56 = vld [vmem:[#allocation7 + $0x18] sm:$0xff] }
  0x27   :  { %v1172_v26 = vperm.slane %v1169_v24, 0  ;;  %v148_v33 = vld [vmem:[#allocation7] sm:$0xff]  ;;  %v162_v61 = vld [vmem:[#allocation7 + $0x70] sm:$0xff]  ;;  %v163_v2 = vld [vmem:[#allocation7 + $0x78] sm:$0xff] }
  0x28   :  { %433 = vmatpush.bf16.msra.mxu1 %v823_v15  ;;  %v160_v39 = vld [vmem:[#allocation7 + $0x60] sm:$0xff] }
  0x2a   :  { %297 = vmatpush.bf16.msra.mxu0 %v813_v3  ;;  %883 = vmatpush.bf16.msra.mxu3 %v813_v3 }
  0x2c   :  { %434 = vmatpush.bf16.msra.mxu1 %v822_v16 }
  0x2e   :  { %298 = vmatpush.bf16.msra.mxu0 %v812_v4  ;;  %884 = vmatpush.bf16.msra.mxu3 %v812_v4 }
  0x30   :  { %435 = vmatpush.bf16.msra.mxu1 %v821_v17 }
  0x32   :  { %299 = vmatpush.bf16.msra.mxu0 %v811_v5  ;;  %885 = vmatpush.bf16.msra.mxu3 %v811_v5 }
  0x34   :  { %436 = vmatpush.bf16.msra.mxu1 %v820_v20 }
  0x36   :  { %300 = vmatpush.bf16.msra.mxu0 %v810_v6  ;;  %886 = vmatpush.bf16.msra.mxu3 %v810_v6 }
  0x38   :  { %437 = vmatpush.bf16.msra.mxu1 %v819_v21 }
  0x3a   :  { %301 = vmatpush.bf16.msra.mxu0 %v809_v7  ;;  %887 = vmatpush.bf16.msra.mxu3 %v809_v7 }
  0x3c   :  { %438 = vmatpush.bf16.msra.mxu1 %v818_v22 }
  0x3d   :  { %302 = vmatmul.bf16.vlgmr.msra.gmra.mxu0 %v801_v8  ;;  %332 = vmatmul.bf16.vlgmr.msra.gmra.mxu3 %v807_v9 }
  0x3e   :  { %888 = vmatpush.bf16.msrb.mxu3 %v824_v14 }
  0x40   :  { %439 = vmatpush.bf16.msra.mxu1 %v817_v23 }
  0x42   :  { %889 = vmatpush.bf16.msrb.mxu3 %v823_v15 }
  0x46   :  { %890 = vmatpush.bf16.msrb.mxu3 %v822_v16 }
  0x4a   :  { %891 = vmatpush.bf16.msrb.mxu3 %v821_v17 }
  0x4d   :  { %307 = vmatmul.bf16.gmra.mxu0 %v802_v10  ;;  %337 = vmatmul.bf16.gmra.mxu3 %v808_v11  ;;  %v152_v11 = vld [vmem:[#allocation7 + $0x20] sm:$0xff] }
  0x4e   :  { %892 = vmatpush.bf16.msrb.mxu3 %v820_v20 }
  0x52   :  { %893 = vmatpush.bf16.msrb.mxu3 %v819_v21 }
  0x56   :  { %894 = vmatpush.bf16.msrb.mxu3 %v818_v22  ;;  %v154_v22 = vld [vmem:[#allocation7 + $0x30] sm:$0xff] }
  0x5a   :  { %895 = vmatpush.bf16.msrb.mxu3 %v817_v23  ;;  %v155_v23 = vld [vmem:[#allocation7 + $0x38] sm:$0xff] }
  0x5d   :  { %312 = vmatmul.bf16.gmra.mxu0 %v803_v12  ;;  %v153_v12 = vld [vmem:[#allocation7 + $0x28] sm:$0xff] }
  0x6d   :  { %317 = vmatmul.bf16.gmra.mxu0 %v804_v13 }
  0x7d   :  { %322 = vmatmul.bf16.gmra.mxu0 %v805_v18 }
  0x8d   :  { %327 = vmatmul.bf16.gmra.mxu0 %v806_v19 }
  0xba   :  { %v303_v25 = vpop.f32.mrf.mxu0 }
  0xbb   :  { %v304_v27 = vadd.f32 %v303_v25, %v1172_v26 }
  0xbd   :  { %v343_v30 = vmax.f32 %v304_v27, 0.0 }
  0xbf   :  { %v359_v36 = vadd.f32 %v343_v30, %v148_v33 }
  0xc0   :  { %v333_v28 = vpop.f32.mrf.mxu3 }
  0xc1   :  { %v334_v32 = vadd.f32 %v333_v28, %v1172_v26 }
  0xc2   :  { %v305_v29 = vpop.f32.mrf.mxu0 }
  0xc3   :  { %v306_v31 = vadd.f32 %v305_v29, %v1172_v26  ;;  %v355_v38 = vmax.f32 %v334_v32, 0.0  ;;  %v831_v32 = vld [vmem:[#allocation10 + $0x30] sm:$0xff] }
  0xc5   :  { %v344_v35 = vmax.f32 %v306_v31, 0.0  ;;  %v371_v45 = vadd.f32 %v355_v38, %v160_v39  ;;  %v832_v31 = vld [vmem:[#allocation10 + $0x38] sm:$0xff]  ;;  %v156_v38 = vld [vmem:[#allocation7 + $0x40] sm:$0xff]  ;;  %v157_v39 = vld [vmem:[#allocation7 + $0x48] sm:$0xff] }
  0xc6   :  { %554 = vmatpush.bf16.msra.mxu2 %v832_v31  ;;  %896 = vmatpush.bf16.msra.mxu3 %v832_v31 }
  0xc7   :  { %v360_v37 = vadd.f32 %v344_v35, %v149_v34  ;;  %v830_v34 = vld [vmem:[#allocation10 + $0x28] sm:$0xff] }
  0xc8   :  { %v335_v40 = vpop.f32.mrf.mxu3 }
  0xc9   :  { %v375_v41 = vpack.c.bf16 %v360_v37, %v359_v36  ;;  %v336_v42 = vadd.f32 %v335_v40, %v1172_v26 }
  0xca   :  { %v308_v43 = vpop.f32.mrf.mxu0  ;;  %555 = vmatpush.bf16.msra.mxu2 %v831_v32  ;;  %897 = vmatpush.bf16.msra.mxu3 %v831_v32 }
  0xcb   :  { %440 = vmatmul.bf16.vlgmr.msra.gmra.mxu1 %v375_v41  ;;  %v356_v46 = vmax.f32 %v336_v42, 0.0  ;;  %v309_v48 = vadd.f32 %v308_v43, %v1172_v26  ;;  %v829_v41 = vld [vmem:[#allocation10 + $0x20] sm:$0xff] }
  0xcd   :  { %v372_v47 = vadd.f32 %v356_v46, %v161_v44  ;;  %v345_v52 = vmax.f32 %v309_v48, 0.0 }
  0xce   :  { %556 = vmatpush.bf16.msra.mxu2 %v830_v34  ;;  %898 = vmatpush.bf16.msra.mxu3 %v830_v34 }
  0xcf   :  { %v381_v49 = vpack.c.bf16 %v372_v47, %v371_v45  ;;  %v361_v58 = vadd.f32 %v345_v52, %v150_v55 }
  0xd0   :  { %v338_v50 = vpop.f32.mrf.mxu3 }
  0xd1   :  { %470 = vmatmul.bf16.vlgmr.msrb.gmra.mxu3 %v381_v49  ;;  %v339_v54 = vadd.f32 %v338_v50, %v1172_v26  ;;  %v158_v50 = vld [vmem:[#allocation7 + $0x50] sm:$0xff] }
  0xd2   :  { %v310_v51 = vpop.f32.mrf.mxu0  ;;  %557 = vmatpush.bf16.msra.mxu2 %v829_v41  ;;  %899 = vmatpush.bf16.msra.mxu3 %v829_v41 }
  0xd3   :  { %v311_v53 = vadd.f32 %v310_v51, %v1172_v26  ;;  %v357_v60 = vmax.f32 %v339_v54, 0.0  ;;  %v159_v51 = vld [vmem:[#allocation7 + $0x58] sm:$0xff] }
  0xd5   :  { %v346_v57 = vmax.f32 %v311_v53, 0.0  ;;  %v373_v3 = vadd.f32 %v357_v60, %v162_v61  ;;  %v383_v60 = vperm.slane %v1169_v24, 1 }
  0xd7   :  { %v362_v59 = vadd.f32 %v346_v57, %v151_v56  ;;  %v828_v56 = vld [vmem:[#allocation10 + $0x18] sm:$0xff]  ;;  %v827_v57 = vld [vmem:[#allocation10 + $0x10] sm:$0xff] }
  0xd8   :  { %v340_v62 = vpop.f32.mrf.mxu3  ;;  %558 = vmatpush.bf16.msra.mxu2 %v828_v56  ;;  %900 = vmatpush.bf16.msra.mxu3 %v828_v56 }
  0xd9   :  { %v376_v63 = vpack.c.bf16 %v362_v59, %v361_v58  ;;  %v341_v0 = vadd.f32 %v340_v62, %v1172_v26  ;;  %v826_v58 = vld [vmem:[#allocation10 + $0x8] sm:$0xff]  ;;  %v825_v59 = vld [vmem:[#allocation10] sm:$0xff] }
  0xda   :  { %v313_v1 = vpop.f32.mrf.mxu0 }
  0xdb   :  { %445 = vmatmul.bf16.gmra.mxu1 %v376_v63  ;;  %v358_v4 = vmax.f32 %v341_v0, 0.0  ;;  %v314_v6 = vadd.f32 %v313_v1, %v1172_v26 }
  0xdc   :  { %559 = vmatpush.bf16.msra.mxu2 %v827_v57  ;;  %901 = vmatpush.bf16.msra.mxu3 %v827_v57 }
  0xdd   :  { %v374_v5 = vadd.f32 %v358_v4, %v163_v2  ;;  %v347_v9 = vmax.f32 %v314_v6, 0.0 }
  0xdf   :  { %v382_v7 = vpack.c.bf16 %v374_v5, %v373_v3  ;;  %v363_v14 = vadd.f32 %v347_v9, %v152_v11 }
  0xe0   :  { %560 = vmatpush.bf16.msra.mxu2 %v826_v58  ;;  %902 = vmatpush.bf16.msra.mxu3 %v826_v58 }
  0xe1   :  { %475 = vmatmul.bf16.gmra.mxu3 %v382_v7 }
  0xe2   :  { %v315_v8 = vpop.f32.mrf.mxu0 }
  0xe3   :  { %v316_v10 = vadd.f32 %v315_v8, %v1172_v26 }
  0xe4   :  { %561 = vmatpush.bf16.msra.mxu2 %v825_v59  ;;  %903 = vmatpush.bf16.msra.mxu3 %v825_v59 }
  0xe5   :  { %v348_v13 = vmax.f32 %v316_v10, 0.0 }
  0xe7   :  { %v364_v15 = vadd.f32 %v348_v13, %v153_v12 }
  0xe9   :  { %v377_v16 = vpack.c.bf16 %v364_v15, %v363_v14 }
  0xea   :  { %v318_v17 = vpop.f32.mrf.mxu0 }
  0xeb   :  { %450 = vmatmul.bf16.gmra.mxu1 %v377_v16  ;;  %v319_v18 = vadd.f32 %v318_v17, %v1172_v26 }
  0xed   :  { %v349_v20 = vmax.f32 %v319_v18, 0.0 }
  0xef   :  { %v365_v27 = vadd.f32 %v349_v20, %v154_v22 }
  0xf2   :  { %v320_v19 = vpop.f32.mrf.mxu0 }
  0xf3   :  { %v321_v21 = vadd.f32 %v320_v19, %v1172_v26 }
  0xf5   :  { %v350_v25 = vmax.f32 %v321_v21, 0.0 }
  0xf7   :  { %v366_v28 = vadd.f32 %v350_v25, %v155_v23 }
  0xf9   :  { %v378_v29 = vpack.c.bf16 %v366_v28, %v365_v27 }
  0xfa   :  { %v323_v30 = vpop.f32.mrf.mxu0 }
  0xfb   :  { %455 = vmatmul.bf16.gmra.mxu1 %v378_v29  ;;  %v324_v33 = vadd.f32 %v323_v30, %v1172_v26 }
  0xfd   :  { %v351_v36 = vmax.f32 %v324_v33, 0.0 }
  0xff   :  { %v367_v42 = vadd.f32 %v351_v36, %v156_v38 }
 0x102   :  { %v325_v35 = vpop.f32.mrf.mxu0 }
 0x103   :  { %v326_v37 = vadd.f32 %v325_v35, %v1172_v26 }
 0x105   :  { %v352_v40 = vmax.f32 %v326_v37, 0.0 }
 0x107   :  { %v368_v43 = vadd.f32 %v352_v40, %v157_v39 }
 0x109   :  { %v379_v44 = vpack.c.bf16 %v368_v43, %v367_v42 }
 0x10a   :  { %v328_v45 = vpop.f32.mrf.mxu0 }
 0x10b   :  { %460 = vmatmul.bf16.gmra.mxu1 %v379_v44  ;;  %v329_v46 = vadd.f32 %v328_v45, %v1172_v26 }
 0x10d   :  { %v353_v48 = vmax.f32 %v329_v46, 0.0 }
 0x10f   :  { %v369_v53 = vadd.f32 %v353_v48, %v158_v50 }
 0x112   :  { %v330_v47 = vpop.f32.mrf.mxu0 }
 0x113   :  { %v331_v49 = vadd.f32 %v330_v47, %v1172_v26 }
 0x115   :  { %v354_v52 = vmax.f32 %v331_v49, 0.0 }
 0x117   :  { %v370_v54 = vadd.f32 %v354_v52, %v159_v51 }
 0x119   :  { %v380_v55 = vpack.c.bf16 %v370_v54, %v369_v53 }
 0x11b   :  { %465 = vmatmul.bf16.gmra.mxu1 %v380_v55  ;;  %v505_v55 = vperm.slane %v1169_v24, 2 }
 0x148   :  { %v441_v26 = vpop.f32.mrf.mxu1 }
 0x149   :  { %v442_v61 = vadd.f32 %v441_v26, %v383_v60 }
 0x14b   :  { %v481_v0 = vmax.f32 %v442_v61, 0.0 }
 0x150   :  { %v443_v62 = vpop.f32.mrf.mxu1 }
 0x151   :  { %v444_v63 = vadd.f32 %v443_v62, %v383_v60 }
 0x153   :  { %v482_v1 = vmax.f32 %v444_v63, 0.0 }
 0x154   :  { %v471_v2 = vpop.f32.mrf.mxu3 }
 0x155   :  { %v497_v3 = vpack.c.bf16 %v482_v1, %v481_v0  ;;  %v472_v5 = vadd.f32 %v471_v2, %v383_v60 }
 0x157   :  { %562 = vmatmul.bf16.vlgmr.msra.gmra.mxu2 %v497_v3  ;;  %v493_v7 = vmax.f32 %v472_v5, 0.0 }
 0x158   :  { %v446_v4 = vpop.f32.mrf.mxu1 }
 0x159   :  { %v447_v9 = vadd.f32 %v446_v4, %v383_v60 }
 0x15b   :  { %v483_v14 = vmax.f32 %v447_v9, 0.0 }
 0x15c   :  { %v473_v6 = vpop.f32.mrf.mxu3 }
 0x15d   :  { %v474_v8 = vadd.f32 %v473_v6, %v383_v60 }
 0x15f   :  { %v494_v10 = vmax.f32 %v474_v8, 0.0 }
 0x160   :  { %v448_v11 = vpop.f32.mrf.mxu1 }
 0x161   :  { %v449_v12 = vadd.f32 %v448_v11, %v383_v60  ;;  %v503_v13 = vpack.c.bf16 %v494_v10, %v493_v7 }
 0x163   :  { %v484_v15 = vmax.f32 %v449_v12, 0.0  ;;  %592 = vmatmul.bf16.vlgmr.msra.gmra.mxu3 %v503_v13 }
 0x164   :  { %v476_v16 = vpop.f32.mrf.mxu3 }
 0x165   :  { %v498_v17 = vpack.c.bf16 %v484_v15, %v483_v14  ;;  %v477_v19 = vadd.f32 %v476_v16, %v383_v60 }
 0x167   :  { %567 = vmatmul.bf16.gmra.mxu2 %v498_v17  ;;  %v495_v21 = vmax.f32 %v477_v19, 0.0 }
 0x168   :  { %v451_v18 = vpop.f32.mrf.mxu1 }
 0x169   :  { %v452_v23 = vadd.f32 %v451_v18, %v383_v60 }
 0x16b   :  { %v485_v30 = vmax.f32 %v452_v23, 0.0 }
 0x16c   :  { %v478_v20 = vpop.f32.mrf.mxu3 }
 0x16d   :  { %v479_v22 = vadd.f32 %v478_v20, %v383_v60 }
 0x16f   :  { %v496_v25 = vmax.f32 %v479_v22, 0.0 }
 0x170   :  { %v453_v27 = vpop.f32.mrf.mxu1 }
 0x171   :  { %v454_v28 = vadd.f32 %v453_v27, %v383_v60  ;;  %v504_v29 = vpack.c.bf16 %v496_v25, %v495_v21 }
 0x173   :  { %v486_v31 = vmax.f32 %v454_v28, 0.0  ;;  %597 = vmatmul.bf16.gmra.mxu3 %v504_v29 }
 0x175   :  { %v499_v32 = vpack.c.bf16 %v486_v31, %v485_v30 }
 0x177   :  { %572 = vmatmul.bf16.gmra.mxu2 %v499_v32 }
 0x178   :  { %v456_v33 = vpop.f32.mrf.mxu1 }
 0x179   :  { %v457_v34 = vadd.f32 %v456_v33, %v383_v60 }
 0x17b   :  { %v487_v37 = vmax.f32 %v457_v34, 0.0 }
 0x180   :  { %v458_v35 = vpop.f32.mrf.mxu1 }
 0x181   :  { %v459_v36 = vadd.f32 %v458_v35, %v383_v60 }
 0x183   :  { %v488_v38 = vmax.f32 %v459_v36, 0.0 }
 0x185   :  { %v500_v39 = vpack.c.bf16 %v488_v38, %v487_v37 }
 0x187   :  { %577 = vmatmul.bf16.gmra.mxu2 %v500_v39 }
 0x188   :  { %v461_v40 = vpop.f32.mrf.mxu1 }
 0x189   :  { %v462_v41 = vadd.f32 %v461_v40, %v383_v60 }
 0x18b   :  { %v489_v44 = vmax.f32 %v462_v41, 0.0 }
 0x190   :  { %v463_v42 = vpop.f32.mrf.mxu1 }
 0x191   :  { %v464_v43 = vadd.f32 %v463_v42, %v383_v60 }
 0x193   :  { %v490_v45 = vmax.f32 %v464_v43, 0.0 }
 0x195   :  { %v501_v46 = vpack.c.bf16 %v490_v45, %v489_v44 }
 0x197   :  { %582 = vmatmul.bf16.gmra.mxu2 %v501_v46 }
 0x198   :  { %v466_v47 = vpop.f32.mrf.mxu1 }
 0x199   :  { %v467_v48 = vadd.f32 %v466_v47, %v383_v60 }
 0x19b   :  { %v491_v51 = vmax.f32 %v467_v48, 0.0 }
 0x1a0   :  { %v468_v49 = vpop.f32.mrf.mxu1 }
 0x1a1   :  { %v469_v50 = vadd.f32 %v468_v49, %v383_v60 }
 0x1a3   :  { %v492_v52 = vmax.f32 %v469_v50, 0.0 }
 0x1a5   :  { %v502_v53 = vpack.c.bf16 %v492_v52, %v491_v51 }
 0x1a7   :  { %587 = vmatmul.bf16.gmra.mxu2 %v502_v53 }
 0x1da   :  { %v563_v54 = vpop.f32.mrf.mxu2 }
 0x1db   :  { %v564_v56 = vadd.f32 %v563_v54, %v505_v55 }
 0x1dd   :  { %v603_v59 = vmax.f32 %v564_v56, 0.0 }
 0x1e2   :  { %v565_v57 = vpop.f32.mrf.mxu2 }
 0x1e3   :  { %v566_v58 = vadd.f32 %v565_v57, %v505_v55 }
 0x1e5   :  { %v604_v26 = vmax.f32 %v566_v58, 0.0 }
 0x1e6   :  { %v593_v61 = vpop.f32.mrf.mxu3 }
 0x1e7   :  { %v836_v62 = vpack.c.bf16 %v604_v26, %v603_v59  ;;  %v594_v0 = vadd.f32 %v593_v61, %v505_v55 }
 0x1e9   :  { %837 = vst [vmem:[#allocation13] sm:$0xff] %v836_v62   ;;  %v615_v2 = vmax.f32 %v594_v0, 0.0 }
 0x1ea   :  { %v568_v63 = vpop.f32.mrf.mxu2 }
 0x1eb   :  { %v569_v3 = vadd.f32 %v568_v63, %v505_v55 }
 0x1ed   :  { %v605_v8 = vmax.f32 %v569_v3, 0.0 }
 0x1ee   :  { %v595_v1 = vpop.f32.mrf.mxu3 }
 0x1ef   :  { %v596_v60 = vadd.f32 %v595_v1, %v505_v55 }
 0x1f1   :  { %v616_v4 = vmax.f32 %v596_v60, 0.0 }
 0x1f2   :  { %v570_v5 = vpop.f32.mrf.mxu2 }
 0x1f3   :  { %v571_v6 = vadd.f32 %v570_v5, %v505_v55  ;;  %v866_v7 = vpack.c.bf16 %v616_v4, %v615_v2 }
 0x1f5   :  { %v606_v24 = vmax.f32 %v571_v6, 0.0  ;;  %878 = vst [vmem:[#allocation13 + $0x30] sm:$0xff] %v866_v7  }
 0x1f6   :  { %v598_v9 = vpop.f32.mrf.mxu3 }
 0x1f7   :  { %v841_v10 = vpack.c.bf16 %v606_v24, %v605_v8  ;;  %v599_v12 = vadd.f32 %v598_v9, %v505_v55 }
 0x1f9   :  { %873 = vst [vmem:[#allocation13 + $0x8] sm:$0xff] %v841_v10   ;;  %v617_v14 = vmax.f32 %v599_v12, 0.0 }
 0x1fa   :  { %v573_v11 = vpop.f32.mrf.mxu2 }
 0x1fb   :  { %v574_v16 = vadd.f32 %v573_v11, %v505_v55 }
 0x1fd   :  { %v607_v21 = vmax.f32 %v574_v16, 0.0 }
 0x1fe   :  { %v600_v13 = vpop.f32.mrf.mxu3 }
 0x1ff   :  { %v601_v15 = vadd.f32 %v600_v13, %v505_v55 }
 0x201   :  { %v618_v17 = vmax.f32 %v601_v15, 0.0 }
 0x202   :  { %v575_v18 = vpop.f32.mrf.mxu2 }
 0x203   :  { %v576_v19 = vadd.f32 %v575_v18, %v505_v55  ;;  %v871_v20 = vpack.c.bf16 %v618_v17, %v617_v14 }
 0x205   :  { %v608_v22 = vmax.f32 %v576_v19, 0.0  ;;  %879 = vst [vmem:[#allocation13 + $0x38] sm:$0xff] %v871_v20  }
 0x207   :  { %v846_v23 = vpack.c.bf16 %v608_v22, %v607_v21 }
 0x209   :  { %874 = vst [vmem:[#allocation13 + $0x10] sm:$0xff] %v846_v23  }
 0x20a   :  { %v578_v25 = vpop.f32.mrf.mxu2 }
 0x20b   :  { %v579_v27 = vadd.f32 %v578_v25, %v505_v55 }
 0x20d   :  { %v609_v30 = vmax.f32 %v579_v27, 0.0 }
 0x212   :  { %v580_v28 = vpop.f32.mrf.mxu2 }
 0x213   :  { %v581_v29 = vadd.f32 %v580_v28, %v505_v55 }
 0x215   :  { %v610_v31 = vmax.f32 %v581_v29, 0.0 }
 0x217   :  { %v851_v32 = vpack.c.bf16 %v610_v31, %v609_v30 }
 0x219   :  { %875 = vst [vmem:[#allocation13 + $0x18] sm:$0xff] %v851_v32  }
 0x21a   :  { %v583_v33 = vpop.f32.mrf.mxu2 }
 0x21b   :  { %v584_v34 = vadd.f32 %v583_v33, %v505_v55 }
 0x21d   :  { %v611_v37 = vmax.f32 %v584_v34, 0.0 }
 0x222   :  { %v585_v35 = vpop.f32.mrf.mxu2 }
 0x223   :  { %v586_v36 = vadd.f32 %v585_v35, %v505_v55 }
 0x225   :  { %v612_v38 = vmax.f32 %v586_v36, 0.0 }
 0x227   :  { %v856_v39 = vpack.c.bf16 %v612_v38, %v611_v37 }
 0x229   :  { %876 = vst [vmem:[#allocation13 + $0x20] sm:$0xff] %v856_v39  }
 0x22a   :  { %v588_v40 = vpop.f32.mrf.mxu2 }
 0x22b   :  { %v589_v41 = vadd.f32 %v588_v40, %v505_v55 }
 0x22d   :  { %v613_v44 = vmax.f32 %v589_v41, 0.0 }
 0x232   :  { %v590_v42 = vpop.f32.mrf.mxu2 }
 0x233   :  { %v591_v43 = vadd.f32 %v590_v42, %v505_v55 }
 0x235   :  { %v614_v45 = vmax.f32 %v591_v43, 0.0 }
 0x237   :  { %v861_v46 = vpack.c.bf16 %v614_v45, %v613_v44 }
 0x239   :  { %877 = vst [vmem:[#allocation13 + $0x28] sm:$0xff] %v861_v46  }
 0x23a   :  { %663 = dma.vmem_to_hbm [thread:$0]  %s656_s5, 1024, %s658_s7, [#allocation4], %s1094_s29, %s1094_s29, %s1095_s30  }
 0x23b   :  { %1091 = dma.done.wait [#allocation4], 1024  }
 0x23c   :  { %1092 = vsyncadd [#allocation4], 4294966272 }
 0x23d   :  { %668 = vsyncpa [#allocation3], 1 }
 0x23e   :  { %669 = vsyncpa [#allocation6], 1 }
 0x23f   :  { %670 = vsyncpa [#allocation9], 1 }
 0x240   :  { %671 = vsyncpa [#allocation12], 1 }
 0x241   :  { %672 = vsyncpa [#allocation4], 1 }

</bundles_post_ra>
